<compile_context>
chip_gen: v6e
topology: v6e:2x2x1
jax: 0.10.0
libtpu: 0.0.40
codegen_flags: <defaults>
</compile_context>

<pallas_src>
import functools
import math

import jax
import jax.numpy as jnp
from jax.experimental import pallas as pl
from jax.experimental.pallas import tpu as pltpu

_GELU_C = math.sqrt(2.0 / math.pi)
_MIB = 1024 * 1024


def _cdiv(a, b):
    return -(-a // b)


def _round_up(x, m):
    return _cdiv(x, m) * m


# ---------------------------------------------------------------------------
# Kernels
# ---------------------------------------------------------------------------
def _phi_mlp_kernel_reduce(x_ref, w1_ref, b1_ref, w2_ref, b2_ref, o_ref, acc_ref):
    """Grid = (M tiles, n_inner tiles); innermost ('arbitrary') axis reduces n_inner."""
    j = pl.program_id(1)

    @pl.when(j == 0)
    def _init():
        # Fold the fc2 bias into the accumulator init (removes the epilogue add).
        acc_ref[...] = jnp.broadcast_to(b2_ref[...], acc_ref.shape)

    # fc1 chunk: (tm, H)bf16 @ (H, ti)bf16 -> f32 on the MXU, + f32 bias.
    h = jnp.dot(x_ref[...], w1_ref[...], preferred_element_type=jnp.float32)
    h = h + b1_ref[...]

    # NewGELUActivation: 0.5*x*(1 + tanh(sqrt(2/pi)*(x + 0.044715*x^3))) in f32.
    g = 0.5 * h * (1.0 + jnp.tanh(_GELU_C * (h + 0.044715 * (h * h * h))))

    # fc2 partial: (tm, ti)bf16 @ (ti, H)bf16 accumulated into f32 VMEM scratch.
    # TODO(synk): on v7x this accumulation could move into an in-kernel
    #   pltpu.emit_pipeline so partials accumulate near the MXU result buffer.
    acc_ref[...] += jnp.dot(g.astype(w2_ref.dtype), w2_ref[...],
                            preferred_element_type=jnp.float32)

    @pl.when(j == pl.num_programs(1) - 1)
    def _finalize():
        o_ref[...] = acc_ref[...].astype(o_ref.dtype)


def _phi_mlp_kernel_single(x_ref, w1_ref, b1_ref, w2_ref, b2_ref, o_ref):
    """No n_inner reduction axis: skip the f32 scratch and both pl.when branches."""
    h = jnp.dot(x_ref[...], w1_ref[...], preferred_element_type=jnp.float32)
    h = h + b1_ref[...]
    g = 0.5 * h * (1.0 + jnp.tanh(_GELU_C * (h + 0.044715 * (h * h * h))))
    y = jnp.dot(g.astype(w2_ref.dtype), w2_ref[...],
                preferred_element_type=jnp.float32) + b2_ref[...]
    o_ref[...] = y.astype(o_ref.dtype)


# ---------------------------------------------------------------------------
# Hardware-aware tile / VMEM selection
# ---------------------------------------------------------------------------
def _tpu_vmem_capacity_bytes():
    try:
        return int(pltpu.get_tpu_info().vmem_capacity_bytes)
    except Exception:
        return 64 * _MIB  # conservative (v7x-sized per-core VMEM) fallback


@functools.lru_cache(maxsize=None)
def _hardware_defaults():
    vmem = _tpu_vmem_capacity_bytes()
    if vmem >= 100 * _MIB:
        # v5e / v6e: 128 MiB VMEM per core, 1 TensorCore per chip. Big tm lifts
        # arithmetic intensity (~tm FLOP / weight byte) past the v6e ridge.
        return dict(tm=640, ti=1024,
                    vmem_cap=max(24 * _MIB, min(vmem - 16 * _MIB, 112 * _MIB)),
                    multi_core=False)
    # v7x-like: 64 MiB VMEM per TensorCore, 2 TensorCores per chip. Never
    # request the full 64 MiB; use smaller ti so tm can stay large.
    return dict(tm=448, ti=512,
                vmem_cap=max(24 * _MIB, min(vmem - 10 * _MIB, 54 * _MIB)),
                multi_core=True)


def _estimate_vmem_bytes(tm_e, ti_e, H, w_bufs, with_acc):
    """Approximate resident VMEM: I/O tiles, weight slabs, acc, implicit f32 temps."""
    b = 2 * tm_e * H * 2                      # x tile, double-buffered bf16
    b += 2 * tm_e * H * 2                     # out tile, double-buffered bf16
    if with_acc:
        b += tm_e * H * 4                     # f32 accumulator scratch
    b += w_bufs * (H * ti_e + ti_e * H) * 2   # W1 + W2 slabs (bf16)
    b += w_bufs * ti_e * 4 + 2 * H * 4        # biases (f32, tiny)
    b += 3 * tm_e * ti_e * 4                  # implicit h / gelu f32 temps + cast
    return b


def _weight_spec(shape, index_map, bufs):
    """Weight BlockSpec with optional deep pipelining; safe fallback to default."""
    if bufs > 2:
        try:
            return pl.BlockSpec(shape, index_map, pipeline_mode=pl.Buffered(bufs))
        except Exception:
            pass
    return pl.BlockSpec(shape, index_map)


def prepare_phi_mlp_weights(w1, b1, w2, b2):
    """Hoist the per-call cast out of the hot path (call once, reuse every step).

    Expects weights already transposed to (in_features, out_features). At Phi-2
    size, skipping the per-call f32->bf16 cast saves ~300 MB of HBM traffic/call.
    """
    return (w1.astype(jnp.bfloat16), b1.astype(jnp.float32),
            w2.astype(jnp.bfloat16), b2.astype(jnp.float32))


# ---------------------------------------------------------------------------
# Wrapper
# ---------------------------------------------------------------------------
def phi_mlp(x, w1, b1, w2, b2, *, tm=None, ti=None, weight_buffers=None):
    """x: (M, hidden); w1: (hidden, n_inner); w2: (n_inner, hidden)."""
    orig_dtype = x.dtype
    M, H = x.shape
    I = w1.shape[1]
    assert w1.shape == (H, I) and w2.shape == (I, H)
    assert b1.shape[-1] == I and b2.shape[-1] == H
    assert H % 128 == 0, "hidden_size must be a multiple of 128 (lane-dense I/O)"

    hw = _hardware_defaults()
    tm = hw["tm"] if tm is None else int(tm)
    ti = hw["ti"] if ti is None else int(ti)
    vmem_cap = int(hw["vmem_cap"])

    # Cast/reshape params only when needed (no-ops if pre-prepared via
    # prepare_phi_mlp_weights); biases stay f32 (tiny, grid-invariant blocks).
    if x.dtype != jnp.bfloat16:
        x = x.astype(jnp.bfloat16)
    if w1.dtype != jnp.bfloat16:
        w1 = w1.astype(jnp.bfloat16)
    if w2.dtype != jnp.bfloat16:
        w2 = w2.astype(jnp.bfloat16)
    b1 = b1.astype(jnp.float32).reshape(1, I)
    b2 = b2.astype(jnp.float32).reshape(1, H)

    # --- Token (M) tiling: minimize zero-row padding; on 2-TC chips keep >= 2
    #     M tiles (when M is big enough) so "parallel" shards across both cores.
    min_m_tiles = 2 if (hw["multi_core"] and M >= 32) else 1
    n_m = max(_cdiv(M, tm), min_m_tiles)
    tm_eff = _round_up(_cdiv(M, n_m), 16)        # multiple of 16 for bf16 packing
    n_m = max(_cdiv(M, tm_eff), min_m_tiles)
    M_pad = n_m * tm_eff

    # --- n_inner tiling (innermost, reduced grid axis). ---
    n_i = _cdiv(I, ti)
    ti_eff = _round_up(_cdiv(I, n_i), 128)       # multiple of 128 lanes
    n_i = _cdiv(I, ti_eff)
    I_pad = n_i * ti_eff

    # Deep weight buffering only in the weight-stream-bound regime (small tm,
    # several inner tiles), e.g. decode-sized M.
    if weight_buffers is None:
        weight_buffers = 3 if (tm_eff < 384 and n_i >= 3) else 2
    weight_buffers = max(2, min(int(weight_buffers), max(2, n_i)))

    # --- Shrink tiles until the footprint fits under the per-generation cap. ---
    for _ in range(8):
        if _estimate_vmem_bytes(tm_eff, ti_eff, H, weight_buffers, n_i > 1) <= vmem_cap:
            break
        if weight_buffers > 2:
            weight_buffers = 2
        elif ti_eff > 256:
            ti_eff = max(256, _round_up(ti_eff // 2, 128))
            n_i = _cdiv(I, ti_eff)
            I_pad = n_i * ti_eff
        elif tm_eff > 64:
            tm_eff = max(64, _round_up(tm_eff // 2, 16))
            n_m = max(_cdiv(M, tm_eff), min_m_tiles)
            M_pad = n_m * tm_eff
        else:
            break

    if M_pad != M:
        x = jnp.pad(x, ((0, M_pad - M), (0, 0)))
    if I_pad != I:
        # Zero-padded inner channels give gelu(0)=0 and zero W2 rows -> exact zeros.
        w1 = jnp.pad(w1, ((0, 0), (0, I_pad - I)))
        b1 = jnp.pad(b1, ((0, 0), (0, I_pad - I)))
        w2 = jnp.pad(w2, ((0, I_pad - I), (0, 0)))

    if n_i == 1:
        # Single-pass variant: no f32 scratch, no accumulator read-modify-write.
        grid = (n_m,)
        kernel = _phi_mlp_kernel_single
        in_specs = [
            pl.BlockSpec((tm_eff, H), lambda i: (i, 0)),     # x tile
            pl.BlockSpec((H, I_pad), lambda i: (0, 0)),      # full W1 (grid-invariant)
            pl.BlockSpec((1, I_pad), lambda i: (0, 0)),      # b1 (f32)
            pl.BlockSpec((I_pad, H), lambda i: (0, 0)),      # full W2 (grid-invariant)
            pl.BlockSpec((1, H), lambda i: (0, 0)),          # b2 (f32)
        ]
        out_spec = pl.BlockSpec((tm_eff, H), lambda i: (i, 0))
        scratch_shapes = []
        dims = ("parallel",)
    else:
        grid = (n_m, n_i)
        kernel = _phi_mlp_kernel_reduce
        in_specs = [
            pl.BlockSpec((tm_eff, H), lambda i, j: (i, 0)),                  # x tile (resident over j)
            _weight_spec((H, ti_eff), lambda i, j: (0, j), weight_buffers),  # W1 column slab
            pl.BlockSpec((1, ti_eff), lambda i, j: (0, j)),                  # b1 slab (f32)
            _weight_spec((ti_eff, H), lambda i, j: (j, 0), weight_buffers),  # W2 row slab
            pl.BlockSpec((1, H), lambda i, j: (0, 0)),                       # b2 (f32, invariant)
        ]
        out_spec = pl.BlockSpec((tm_eff, H), lambda i, j: (i, 0))
        scratch_shapes = [pltpu.VMEM((tm_eff, H), jnp.float32)]              # f32 accumulator
        dims = ("parallel", "arbitrary")

    out = pl.pallas_call(
        kernel,
        out_shape=jax.ShapeDtypeStruct((M_pad, H), jnp.bfloat16),
        grid_spec=pltpu.PrefetchScalarGridSpec(
            num_scalar_prefetch=0,
            grid=grid,
            in_specs=in_specs,
            out_specs=out_spec,
            scratch_shapes=scratch_shapes,
        ),
        compiler_params=pltpu.CompilerParams(
            dimension_semantics=dims,
            vmem_limit_bytes=vmem_cap,
        ),
    )(x, w1, b1, w2, b2)

    out = out[:M]
    if orig_dtype != jnp.bfloat16:
        out = out.astype(orig_dtype)
    return out


def reference_mlp(x, w1, b1, w2, b2):
    """Pure-JAX f32 reference on the same (bf16-stored) operands."""
    xf = x.astype(jnp.float32)
    h = xf @ w1.astype(jnp.float32) + b1.astype(jnp.float32)
    g = 0.5 * h * (1.0 + jnp.tanh(_GELU_C * (h + 0.044715 * h ** 3)))
    y = g @ w2.astype(jnp.float32) + b2.astype(jnp.float32)
    return y


if __name__ == "__main__":
    key = jax.random.PRNGKey(0)

    def make_case(k, batch, seq, hidden, n_inner):
        kx, kw1, kb1, kw2, kb2 = jax.random.split(k, 5)
        # nn.Linear-equivalent params, stored pre-transposed (in, out) and
        # pre-cast (bf16 weights / f32 biases) so the wrapper does no per-call work.
        w1 = (jax.random.normal(kw1, (hidden, n_inner), jnp.float32)
              * (1.0 / math.sqrt(hidden))).astype(jnp.bfloat16)
        b1 = jax.random.normal(kb1, (n_inner,), jnp.float32) * 0.02
        w2 = (jax.random.normal(kw2, (n_inner, hidden), jnp.float32)
              * (1.0 / math.sqrt(n_inner))).astype(jnp.bfloat16)
        b2 = jax.random.normal(kb2, (hidden,), jnp.float32) * 0.02
        h_in = jax.random.normal(kx, (batch, seq, hidden), jnp.float32).astype(jnp.bfloat16)
        return h_in, w1, b1, w2, b2

    k1, k2 = jax.random.split(key)

    # --- Cases A/B: hidden=128, n_inner=512. A uses the single-pass kernel
    #     (default ti -> one inner tile); B forces ti=128 to exercise the
    #     reduction kernel + deep weight-buffering heuristic on the same data.
    batch, seq, hidden = 2, 8, 128
    h_in, w1, b1, w2, b2 = make_case(k1, batch, seq, hidden, 4 * hidden)
    w1p, b1p, w2p, b2p = prepare_phi_mlp_weights(w1, b1, w2, b2)

    x2d = h_in.reshape(batch * seq, hidden)
    ref = reference_mlp(x2d, w1p, b1p, w2p, b2p)

    out_a = phi_mlp(x2d, w1p, b1p, w2p, b2p)            # single-pass path
    out_b = phi_mlp(x2d, w1p, b1p, w2p, b2p, ti=128)    # reduction path (4 inner tiles)
    jax.block_until_ready((out_a, out_b))

    err_a = float(jnp.max(jnp.abs(out_a.astype(jnp.float32) - ref)))
    err_b = float(jnp.max(jnp.abs(out_b.astype(jnp.float32) - ref)))
    assert err_a < 3e-2, f"single-pass kernel max abs error too large: {err_a}"
    assert err_b < 3e-2, f"reduction kernel max abs error too large: {err_b}"

    out3d = out_a.reshape(batch, seq, hidden)            # back to (batch, seq, hidden)
    assert out3d.shape == (batch, seq, hidden)

    # --- Case C: M=18 (token padding) and n_inner=640 (inner-dim padding). ---
    h_c, w1c, b1c, w2c, b2c = make_case(k2, 2, 9, 128, 640)
    xc = h_c.reshape(2 * 9, 128)
    out_c = phi_mlp(xc, w1c, b1c, w2c, b2c, ti=512)
    jax.block_until_ready(out_c)
    err_c = float(jnp.max(jnp.abs(out_c.astype(jnp.float32)
                                  - reference_mlp(xc, w1c, b1c, w2c, b2c))))
    assert err_c < 3e-2, f"padded-case kernel max abs error too large: {err_c}"

    print("KERNEL_OK")
</pallas_src>

<mosaic_0001>
module attributes {stable_mosaic.version = 11 : i64} {
  func.func @_phi_mlp_kernel_single(%arg0: i32, %arg1: memref<16x128xbf16, #tpu.memory_space<vmem>>, %arg2: memref<128x512xbf16, #tpu.memory_space<vmem>>, %arg3: memref<1x512xf32, #tpu.memory_space<vmem>>, %arg4: memref<512x128xbf16, #tpu.memory_space<vmem>>, %arg5: memref<1x128xf32, #tpu.memory_space<vmem>>, %arg6: memref<16x128xbf16, #tpu.memory_space<vmem>>) attributes {dimension_semantics = [#tpu.dimension_semantics<parallel>], iteration_bounds = array<i64: 1>, scalar_prefetch = 0 : i64, scratch_operands = 0 : i64, tpu.core_type = #tpu.core_type<tc>, window_params = [{transform_indices = @transform_0, window_bounds = array<i64: 16, 128>}, {pipeline_mode = #tpu.pipeline_mode<synchronous>, transform_indices = @transform_1, window_bounds = array<i64: 128, 512>}, {pipeline_mode = #tpu.pipeline_mode<synchronous>, transform_indices = @transform_2, window_bounds = array<i64: 1, 512>}, {pipeline_mode = #tpu.pipeline_mode<synchronous>, transform_indices = @transform_3, window_bounds = array<i64: 512, 128>}, {pipeline_mode = #tpu.pipeline_mode<synchronous>, transform_indices = @transform_4, window_bounds = array<i64: 1, 128>}, {transform_indices = @transform_5, window_bounds = array<i64: 16, 128>}]} {
    %c0 = arith.constant 0 : index
    %c0_0 = arith.constant 0 : index
    %0 = vector.load %arg1[%c0, %c0_0] : memref<16x128xbf16, #tpu.memory_space<vmem>>, vector<16x128xbf16>
    %c0_1 = arith.constant 0 : index
    %c0_2 = arith.constant 0 : index
    %1 = vector.load %arg2[%c0_1, %c0_2] : memref<128x512xbf16, #tpu.memory_space<vmem>>, vector<128x512xbf16>
    %cst = arith.constant dense<0.000000e+00> : vector<16x512xf32>
    %2 = tpu.matmul %0, %1, %cst {dimension_numbers = #tpu.dot_dimension_numbers<[1], [0], [0], [1], [0, 0, 1, 1], [], []>} : vector<16x128xbf16>, vector<128x512xbf16>, vector<16x512xf32> -> vector<16x512xf32>
    %c0_3 = arith.constant 0 : index
    %c0_4 = arith.constant 0 : index
    %3 = vector.load %arg3[%c0_3, %c0_4] : memref<1x512xf32, #tpu.memory_space<vmem>>, vector<1x512xf32>
    %4 = vector.broadcast %3 : vector<1x512xf32> to vector<16x512xf32>
    %5 = arith.addf %2, %4 : vector<16x512xf32>
    %cst_5 = arith.constant 5.000000e-01 : f32
    %6 = vector.broadcast %cst_5 : f32 to vector<16x512xf32>
    %7 = arith.mulf %6, %5 : vector<16x512xf32>
    %8 = arith.mulf %5, %5 : vector<16x512xf32>
    %9 = arith.mulf %8, %5 : vector<16x512xf32>
    %cst_6 = arith.constant 4.471500e-02 : f32
    %10 = vector.broadcast %cst_6 : f32 to vector<16x512xf32>
    %11 = arith.mulf %10, %9 : vector<16x512xf32>
    %12 = arith.addf %5, %11 : vector<16x512xf32>
    %cst_7 = arith.constant 0.797884583 : f32
    %13 = vector.broadcast %cst_7 : f32 to vector<16x512xf32>
    %14 = arith.mulf %13, %12 : vector<16x512xf32>
    %15 = math.tanh %14 : vector<16x512xf32>
    %cst_8 = arith.constant 1.000000e+00 : f32
    %16 = vector.broadcast %cst_8 : f32 to vector<16x512xf32>
    %17 = arith.addf %16, %15 : vector<16x512xf32>
    %18 = arith.mulf %7, %17 : vector<16x512xf32>
    %19 = arith.truncf %18 : vector<16x512xf32> to vector<16x512xbf16>
    %c0_9 = arith.constant 0 : index
    %c0_10 = arith.constant 0 : index
    %20 = vector.load %arg4[%c0_9, %c0_10] : memref<512x128xbf16, #tpu.memory_space<vmem>>, vector<512x128xbf16>
    %cst_11 = arith.constant dense<0.000000e+00> : vector<16x128xf32>
    %21 = tpu.matmul %19, %20, %cst_11 {dimension_numbers = #tpu.dot_dimension_numbers<[1], [0], [0], [1], [0, 0, 1, 1], [], []>} : vector<16x512xbf16>, vector<512x128xbf16>, vector<16x128xf32> -> vector<16x128xf32>
    %c0_12 = arith.constant 0 : index
    %c0_13 = arith.constant 0 : index
    %22 = vector.load %arg5[%c0_12, %c0_13] : memref<1x128xf32, #tpu.memory_space<vmem>>, vector<1x128xf32>
    %23 = vector.broadcast %22 : vector<1x128xf32> to vector<16x128xf32>
    %24 = arith.addf %21, %23 : vector<16x128xf32>
    %25 = arith.truncf %24 : vector<16x128xf32> to vector<16x128xbf16>
    %c0_14 = arith.constant 0 : index
    %c0_15 = arith.constant 0 : index
    %26 = vector.load %arg6[%c0_14, %c0_15] : memref<16x128xbf16, #tpu.memory_space<vmem>>, vector<16x128xbf16>
    tpu.vector_store %arg6[%c0_14, %c0_15], %25 {strides = array<i32>} : memref<16x128xbf16, #tpu.memory_space<vmem>>, vector<16x128xbf16>,
    return
  }
  func.func @transform_0(%arg0: i32) -> (i32, i32) {
    %c0_i32 = arith.constant 0 : i32
    %c0_i32_0 = arith.constant 0 : i32
    return %arg0, %c0_i32 : i32, i32
  }
  func.func @transform_1(%arg0: i32) -> (i32, i32) {
    %c0_i32 = arith.constant 0 : i32
    %c0_i32_0 = arith.constant 0 : i32
    %c0_i32_1 = arith.constant 0 : i32
    return %c0_i32, %c0_i32_0 : i32, i32
  }
  func.func @transform_2(%arg0: i32) -> (i32, i32) {
    %c0_i32 = arith.constant 0 : i32
    %c0_i32_0 = arith.constant 0 : i32
    %c0_i32_1 = arith.constant 0 : i32
    return %c0_i32, %c0_i32_0 : i32, i32
  }
  func.func @transform_3(%arg0: i32) -> (i32, i32) {
    %c0_i32 = arith.constant 0 : i32
    %c0_i32_0 = arith.constant 0 : i32
    %c0_i32_1 = arith.constant 0 : i32
    return %c0_i32, %c0_i32_0 : i32, i32
  }
  func.func @transform_4(%arg0: i32) -> (i32, i32) {
    %c0_i32 = arith.constant 0 : i32
    %c0_i32_0 = arith.constant 0 : i32
    %c0_i32_1 = arith.constant 0 : i32
    return %c0_i32, %c0_i32_0 : i32, i32
  }
  func.func @transform_5(%arg0: i32) -> (i32, i32) {
    %c0_i32 = arith.constant 0 : i32
    %c0_i32_0 = arith.constant 0 : i32
    return %arg0, %c0_i32 : i32, i32
  }
}

</mosaic_0001>

<bundles_post_ra>
// kernel: tpu_custom_call.1
= control target key start
LH: loop header
LB: loop body
LE: loop exit
PB: predicated region body
PF: predicated region fallthrough
CT: control target
= control target key end

     0   :  { %10 = vsyncpa [#allocation3], 0  ;;  %s1269_s0 = inlined_call_operand.hbm [shape: bf16[16,128], index: 0, kind: input, shape index: {}]   ;;  %s1270_s1 = inlined_call_operand.hbm [shape: bf16[128,512], index: 1, kind: input, shape index: {}]   ;;  %s1271_s2 = inlined_call_operand.hbm [shape: f32[1,512], index: 2, kind: input, shape index: {}]   ;;  %s1272_s3 = inlined_call_operand.hbm [shape: bf16[512,128], index: 3, kind: input, shape index: {}]   ;;  %s1273_s4 = inlined_call_operand.vmem [shape: f32[1,128], index: 4, kind: input, shape index: {}]   ;;  %s1274_s5 = inlined_call_operand.hbm [shape: bf16[16,128], index: 5, kind: output, shape index: {}]  }
   0x1   :  { %11 = vsyncpa [#allocation6], 0 }
   0x2   :  { %12 = vsyncpa [#allocation9], 0 }
   0x3   :  { %13 = vsyncpa [#allocation4], 0  ;;  %s1167_s18 = smov [#allocation5]  }
   0x4   :  { %s31_s19 = sshll.u32 %s1167_s18, 4  ;;  %s32_s19 = int_to_ptr.vmem [resolvable:$true] %s31_s19 }
   0x5   :  { %s1067_s20 = scalar_lea.vmem %s32_s19, 4096  ;;  %p1072_p1 = scmp.lt.s32.totalorder %s32_s19, %s32_s19 }
   0x6   :  { %p1068_p0 = scmp.ne.s32.totalorder %s32_s19, %s1067_s20  ;;  %p1073_p2 = scmp.lt.s32.totalorder %s1067_s20, %s1067_s20 }
   0x8   :  { %p1074_p3 = por %p1073_p2, %p1072_p1 }
   0xa   :  { %p1075_p4 = pnand %p1074_p3, %p1068_p0 }
   0xc   :  { %1078 = shalt.err (!%p1075_p4)
}
   0xd   :  { %s1168_s21 = smov 256   ;;  %s1169_s22 = smov 16  }
   0xe   :  { %37 = dma.hbm_to_vmem [thread:$0]  %s1270_s1, 4096, %s32_s19, [#allocation6], %s1168_s21, %s1168_s21, %s1169_s22  }
   0xf   :  { %s1170_s25 = smov [#allocation2]  }
  0x10   :  { %s19_s26 = sshll.u32 %s1170_s25, 4  ;;  %s20_s26 = int_to_ptr.vmem [resolvable:$true] %s19_s26 }
  0x11   :  { %s1087_s27 = scalar_lea.vmem %s20_s26, 128  ;;  %p1092_p6 = scmp.lt.s32.totalorder %s20_s26, %s20_s26 }
  0x12   :  { %p1088_p5 = scmp.ne.s32.totalorder %s20_s26, %s1087_s27  ;;  %p1093_p7 = scmp.lt.s32.totalorder %s1087_s27, %s1087_s27 }
  0x14   :  { %p1094_p8 = por %p1093_p7, %p1092_p6 }
  0x16   :  { %p1095_p9 = pnand %p1094_p8, %p1088_p5 }
  0x18   :  { %1098 = shalt.err (!%p1095_p9)
}
  0x19   :  { %s1171_s28 = smov 64   ;;  %s1172_s29 = smov 4  }
  0x1a   :  { %25 = dma.hbm_to_vmem [thread:$0]  %s1269_s0, 128, %s20_s26, [#allocation3], %s1171_s28, %s1171_s28, %s1172_s29  }
  0x1b   :  { %s1173_s1 = smov [#allocation7]   ;;  %s1174_s8 = smov [#allocation8]  }
  0x1c   :  { %s44_s7 = sshll.u32 %s1173_s1, 4  ;;  %s53_s9 = sshll.u32 %s1174_s8, 4  ;;  %s45_s7 = int_to_ptr.vmem [resolvable:$true] %s44_s7  ;;  %s54_s9 = int_to_ptr.vmem [resolvable:$true] %s53_s9 }
  0x1d   :  { %s1107_s10 = scalar_lea.vmem %s45_s7, 64  ;;  %p1112_p11 = scmp.lt.s32.totalorder %s45_s7, %s45_s7 }
  0x1e   :  { %p1108_p10 = scmp.ne.s32.totalorder %s45_s7, %s1107_s10  ;;  %p1113_p12 = scmp.lt.s32.totalorder %s1107_s10, %s1107_s10 }
  0x20   :  { %p1114_p13 = por %p1113_p12, %p1112_p11 }
  0x22   :  { %p1115_p0 = pnand %p1114_p13, %p1108_p10 }
  0x24   :  { %1118 = shalt.err (!%p1115_p0)
}
  0x25   :  { %47 = dma.hbm_to_vmem [thread:$0]  %s1271_s2, 64, %s45_s7, [#allocation6]  }
  0x26   :  { %s1127_s13 = scalar_lea.vmem %s54_s9, 4096  ;;  %p1132_p2 = scmp.lt.s32.totalorder %s54_s9, %s54_s9 }
  0x27   :  { %p1128_p1 = scmp.ne.s32.totalorder %s54_s9, %s1127_s13  ;;  %p1133_p3 = scmp.lt.s32.totalorder %s1127_s13, %s1127_s13 }
  0x29   :  { %p1134_p4 = por %p1133_p3, %p1132_p2 }
  0x2b   :  { %p1135_p5 = pnand %p1134_p4, %p1128_p1 }
  0x2d   :  { %1138 = shalt.err (!%p1135_p5)
}
  0x2e   :  { %59 = dma.hbm_to_vmem [thread:$0]  %s1272_s3, 4096, %s54_s9, [#allocation9], %s1171_s28, %s1171_s28, %s1172_s29  }
  0x2f   :  { %1159 = dma.done.wait [#allocation3], 128  }
  0x30   :  { %1160 = vsyncadd [#allocation3], 4294967168 }
  0x31   :  { %1161 = dma.done.wait [#allocation6], 4160  }
  0x32   :  { %1162 = vsyncadd [#allocation6], 4294963136 }
  0x33   :  { %1163 = dma.done.wait [#allocation9], 4096  }
  0x34   :  { %1164 = vsyncadd [#allocation9], 4294963200  ;;  %v1175_v0 = vmov 0   ;;  %v962_v1 = vld [vmem:[#allocation5 + $0xe4] ss:$16 sps:$4 sm:$0xff]   ;;  %v1010_v33 = vld [vmem:[#allocation2] sm:$0xff]  }
  0x35   :  { %329 = vmatprep.mubr.bf16.mxu0 %v1175_v0  ;;  %372 = vmatprep.mubr.bf16.mxu1 %v1175_v0  ;;  %v964_v2 = vld [vmem:[#allocation5 + $0xec] ss:$16 sps:$4 sm:$0xff]   ;;  %v966_v3 = vld [vmem:[#allocation5 + $0xe0] ss:$16 sps:$4 sm:$0xff]   ;;  %v967_v4 = vld [vmem:[#allocation5 + $0xe8] ss:$16 sps:$4 sm:$0xff]  }
  0x36   :  { %297 = vmatprep.subr.bf16.mxu0 %v962_v1  ;;  %340 = vmatprep.subr.bf16.mxu1 %v964_v2  ;;  %v968_v5 = vld [vmem:[#allocation5 + $0xc4] ss:$16 sps:$4 sm:$0xff]   ;;  %v970_v6 = vld [vmem:[#allocation5 + $0xcc] ss:$16 sps:$4 sm:$0xff]   ;;  %v972_v7 = vld [vmem:[#allocation5 + $0xc0] ss:$16 sps:$4 sm:$0xff]   ;;  %v111_v2 = vlaneseq }
  0x37   :  { %298 = vmatpush1.bf16.msra.mxu0 %v966_v3  ;;  %341 = vmatpush1.bf16.msra.mxu1 %v967_v4  ;;  %v973_v8 = vld [vmem:[#allocation5 + $0xc8] ss:$16 sps:$4 sm:$0xff]   ;;  %v974_v9 = vld [vmem:[#allocation5 + $0xa4] ss:$16 sps:$4 sm:$0xff]   ;;  %v976_v10 = vld [vmem:[#allocation5 + $0xac] ss:$16 sps:$4 sm:$0xff]  }
  0x38   :  { %299 = vmatprep.subr.bf16.mxu0 %v968_v5  ;;  %342 = vmatprep.subr.bf16.mxu1 %v970_v6  ;;  %v978_v11 = vld [vmem:[#allocation5 + $0xa0] ss:$16 sps:$4 sm:$0xff]   ;;  %v979_v12 = vld [vmem:[#allocation5 + $0xa8] ss:$16 sps:$4 sm:$0xff]   ;;  %v980_v13 = vld [vmem:[#allocation5 + $0x84] ss:$16 sps:$4 sm:$0xff]  }
  0x39   :  { %v982_v14 = vld [vmem:[#allocation5 + $0x8c] ss:$16 sps:$4 sm:$0xff]   ;;  %v984_v15 = vld [vmem:[#allocation5 + $0x80] ss:$16 sps:$4 sm:$0xff]   ;;  %v985_v16 = vld [vmem:[#allocation5 + $0x88] ss:$16 sps:$4 sm:$0xff]  }
  0x3a   :  { %v986_v17 = vld [vmem:[#allocation5 + $0x64] ss:$16 sps:$4 sm:$0xff]   ;;  %v988_v18 = vld [vmem:[#allocation5 + $0x6c] ss:$16 sps:$4 sm:$0xff]   ;;  %v990_v19 = vld [vmem:[#allocation5 + $0x60] ss:$16 sps:$4 sm:$0xff]  }
  0x3b   :  { %300 = vmatpush1.bf16.msra.mxu0 %v972_v7  ;;  %343 = vmatpush1.bf16.msra.mxu1 %v973_v8  ;;  %v991_v20 = vld [vmem:[#allocation5 + $0x68] ss:$16 sps:$4 sm:$0xff]   ;;  %v992_v21 = vld [vmem:[#allocation5 + $0x44] ss:$16 sps:$4 sm:$0xff]   ;;  %v994_v22 = vld [vmem:[#allocation5 + $0x4c] ss:$16 sps:$4 sm:$0xff]  }
  0x3c   :  { %301 = vmatprep.subr.bf16.mxu0 %v974_v9  ;;  %344 = vmatprep.subr.bf16.mxu1 %v976_v10  ;;  %v996_v23 = vld [vmem:[#allocation5 + $0x40] ss:$16 sps:$4 sm:$0xff]   ;;  %v997_v24 = vld [vmem:[#allocation5 + $0x48] ss:$16 sps:$4 sm:$0xff]   ;;  %v998_v25 = vld [vmem:[#allocation5 + $0x24] ss:$16 sps:$4 sm:$0xff]  }
  0x3d   :  { %v1000_v26 = vld [vmem:[#allocation5 + $0x2c] ss:$16 sps:$4 sm:$0xff]   ;;  %v1002_v27 = vld [vmem:[#allocation5 + $0x20] ss:$16 sps:$4 sm:$0xff]   ;;  %v1003_v28 = vld [vmem:[#allocation5 + $0x28] ss:$16 sps:$4 sm:$0xff]  }
  0x3e   :  { %v1004_v29 = vld [vmem:[#allocation5 + $0x4] ss:$16 sps:$4 sm:$0xff]   ;;  %v1006_v30 = vld [vmem:[#allocation5 + $0xc] ss:$16 sps:$4 sm:$0xff]   ;;  %v1008_v31 = vld [vmem:[#allocation5] ss:$16 sps:$4 sm:$0xff]  }
  0x3f   :  { %302 = vmatpush1.bf16.msra.mxu0 %v978_v11  ;;  %345 = vmatpush1.bf16.msra.mxu1 %v979_v12  ;;  %v1009_v32 = vld [vmem:[#allocation5 + $0x8] ss:$16 sps:$4 sm:$0xff]   ;;  %v1011_v34 = vld [vmem:[#allocation8 + $0x78] sm:$0xff]   ;;  %v1019_v42 = vld [vmem:[#allocation8 + $0x68] sm:$0xff]   ;;  %v112_v3 = vshrl.u32 %v111_v2, 7  ;;  %s1176_s15 = smov [#allocation10]  }
  0x40   :  { %303 = vmatprep.subr.bf16.mxu0 %v980_v13  ;;  %346 = vmatprep.subr.bf16.mxu1 %v982_v14  ;;  %v1012_v35 = vld [vmem:[#allocation8 + $0xf8] sm:$0xff]   ;;  %v1015_v38 = vld [vmem:[#allocation8 + $0x70] sm:$0xff]   ;;  %v1020_v43 = vld [vmem:[#allocation8 + $0xe8] sm:$0xff]   ;;  %s819_s16 = sshll.u32 %s1176_s15, 4  ;;  %s820_s16 = int_to_ptr.vmem [resolvable:$true] %s819_s16 }
  0x41   :  { %v1013_v36 = vld [vmem:[#allocation8 + $0x38] sm:$0xff]   ;;  %v1016_v39 = vld [vmem:[#allocation8 + $0xf0] sm:$0xff]   ;;  %v1021_v44 = vld [vmem:[#allocation8 + $0x28] sm:$0xff]   ;;  %v113_v4 = vsub.s32 0, %v112_v3  ;;  %v121_v5 = vsub.s32 2, %v112_v3  ;;  %v117_v7 = vsub.s32 1, %v112_v3  ;;  %p1144_p7 = scmp.lt.s32.totalorder %s820_s16, %s820_s16 }
  0x42   :  { %v1014_v37 = vld [vmem:[#allocation8 + $0xb8] sm:$0xff]   ;;  %v1017_v40 = vld [vmem:[#allocation8 + $0x30] sm:$0xff]   ;;  %v1022_v45 = vld [vmem:[#allocation8 + $0xa8] sm:$0xff]   ;;  %v125_v8 = vsub.s32 3, %v112_v3  ;;  %s1139_s17 = scalar_lea.vmem %s820_s16, 128 }
  0x43   :  { %304 = vmatpush1.bf16.msra.mxu0 %v984_v15  ;;  %347 = vmatpush1.bf16.msra.mxu1 %v985_v16  ;;  %v1018_v41 = vld [vmem:[#allocation8 + $0xb0] sm:$0xff]   ;;  %v1023_v46 = vld [vmem:[#allocation8 + $0x60] sm:$0xff]   ;;  %v1027_v50 = vld [vmem:[#allocation8 + $0x58] sm:$0xff]   ;;  %p1140_p6 = scmp.ne.s32.totalorder %s820_s16, %s1139_s17  ;;  %p1145_p8 = scmp.lt.s32.totalorder %s1139_s17, %s1139_s17 }
  0x44   :  { %305 = vmatprep.subr.bf16.mxu0 %v986_v17  ;;  %348 = vmatprep.subr.bf16.mxu1 %v988_v18  ;;  %v1024_v47 = vld [vmem:[#allocation8 + $0xe0] sm:$0xff]   ;;  %v1028_v51 = vld [vmem:[#allocation8 + $0xd8] sm:$0xff]   ;;  %v1031_v54 = vld [vmem:[#allocation8 + $0x50] sm:$0xff]  }
  0x45   :  { %v1025_v48 = vld [vmem:[#allocation8 + $0x20] sm:$0xff]   ;;  %v1029_v52 = vld [vmem:[#allocation8 + $0x18] sm:$0xff]   ;;  %v1032_v55 = vld [vmem:[#allocation8 + $0xd0] sm:$0xff]   ;;  %p1146_p9 = por %p1145_p8, %p1144_p7 }
  0x46   :  { %v1026_v49 = vld [vmem:[#allocation8 + $0xa0] sm:$0xff]   ;;  %v1030_v53 = vld [vmem:[#allocation8 + $0x98] sm:$0xff]   ;;  %v1033_v56 = vld [vmem:[#allocation8 + $0x10] sm:$0xff]  }
  0x47   :  { %306 = vmatpush1.bf16.msra.mxu0 %v990_v19  ;;  %349 = vmatpush1.bf16.msra.mxu1 %v991_v20  ;;  %v1034_v57 = vld [vmem:[#allocation8 + $0x90] sm:$0xff]   ;;  %v1035_v58 = vld [vmem:[#allocation8 + $0x48] sm:$0xff]   ;;  %v1039_v62 = vld [vmem:[#allocation8 + $0x40] sm:$0xff]   ;;  %p1147_p10 = pnand %p1146_p9, %p1140_p6 }
  0x48   :  { %307 = vmatprep.subr.bf16.mxu0 %v992_v21  ;;  %350 = vmatprep.subr.bf16.mxu1 %v994_v22  ;;  %v1036_v59 = vld [vmem:[#allocation8 + $0xc8] sm:$0xff]   ;;  %v1040_v63 = vld [vmem:[#allocation8 + $0xc0] sm:$0xff]   ;;  %v109_v6 = vld [vmem:[#allocation7] sm:$0xf] }
  0x49   :  { %v1037_v60 = vld [vmem:[#allocation8 + $0x8] sm:$0xff]   ;;  %v1041_v0 = vld [vmem:[#allocation8] sm:$0xff]   ;;  %v114_v9 = vrot.slane %v109_v6, %v113_v4  ;;  %v122_v10 = vrot.slane %v109_v6, %v121_v5  ;;  %v118_v13 = vrot.slane %v109_v6, %v117_v7  ;;  %v126_v14 = vrot.slane %v109_v6, %v125_v8 }
  0x4a   :  { %v1038_v61 = vld [vmem:[#allocation8 + $0x88] sm:$0xff]   ;;  %v1042_v1 = vld [vmem:[#allocation8 + $0x80] sm:$0xff]  }
  0x4b   :  { %308 = vmatpush1.bf16.msra.mxu0 %v996_v23  ;;  %351 = vmatpush1.bf16.msra.mxu1 %v997_v24 }
  0x4c   :  { %309 = vmatprep.subr.bf16.mxu0 %v998_v25  ;;  %352 = vmatprep.subr.bf16.mxu1 %v1000_v26 }
  0x4f   :  { %310 = vmatpush1.bf16.msra.mxu0 %v1002_v27  ;;  %353 = vmatpush1.bf16.msra.mxu1 %v1003_v28 }
  0x50   :  { %311 = vmatprep.subr.bf16.mxu0 %v1004_v29  ;;  %354 = vmatprep.subr.bf16.mxu1 %v1006_v30 }
  0x53   :  { %312 = vmatpush1.bf16.msra.mxu0 %v1008_v31  ;;  %355 = vmatpush1.bf16.msra.mxu1 %v1009_v32 }
  0x54   :  { %908 = vmatprep.subr.bf16.mxu0 %v1011_v34  ;;  %930 = vmatprep.subr.bf16.mxu1 %v1012_v35 }
  0x56   :  { %330 = vmatmul.mubr.bf16.vlgmr.msra.gmra.mxu0 %v1010_v33  ;;  %373 = vmatmul.mubr.bf16.vlgmr.msra.gmra.mxu1 %v1010_v33 }
  0x57   :  { %909 = vmatpush3.bf16.msra.mxu0 %v1013_v36  ;;  %931 = vmatpush3.bf16.msra.mxu1 %v1014_v37 }
  0x58   :  { %910 = vmatprep.subr.bf16.mxu0 %v1015_v38  ;;  %932 = vmatprep.subr.bf16.mxu1 %v1016_v39 }
  0x5b   :  { %911 = vmatpush3.bf16.msra.mxu0 %v1017_v40  ;;  %933 = vmatpush3.bf16.msra.mxu1 %v1018_v41 }
  0x5c   :  { %912 = vmatprep.subr.bf16.mxu0 %v1019_v42  ;;  %934 = vmatprep.subr.bf16.mxu1 %v1020_v43 }
  0x5f   :  { %913 = vmatpush3.bf16.msra.mxu0 %v1021_v44  ;;  %935 = vmatpush3.bf16.msra.mxu1 %v1022_v45 }
  0x60   :  { %914 = vmatprep.subr.bf16.mxu0 %v1023_v46  ;;  %936 = vmatprep.subr.bf16.mxu1 %v1024_v47 }
  0x63   :  { %915 = vmatpush3.bf16.msra.mxu0 %v1025_v48  ;;  %937 = vmatpush3.bf16.msra.mxu1 %v1026_v49 }
  0x64   :  { %916 = vmatprep.subr.bf16.mxu0 %v1027_v50  ;;  %938 = vmatprep.subr.bf16.mxu1 %v1028_v51 }
  0x67   :  { %917 = vmatpush3.bf16.msra.mxu0 %v1029_v52  ;;  %939 = vmatpush3.bf16.msra.mxu1 %v1030_v53 }
  0x68   :  { %918 = vmatprep.subr.bf16.mxu0 %v1031_v54  ;;  %940 = vmatprep.subr.bf16.mxu1 %v1032_v55 }
  0x6b   :  { %919 = vmatpush3.bf16.msra.mxu0 %v1033_v56  ;;  %941 = vmatpush3.bf16.msra.mxu1 %v1034_v57 }
  0x6c   :  { %920 = vmatprep.subr.bf16.mxu0 %v1035_v58  ;;  %942 = vmatprep.subr.bf16.mxu1 %v1036_v59 }
  0x6f   :  { %921 = vmatpush3.bf16.msra.mxu0 %v1037_v60  ;;  %943 = vmatpush3.bf16.msra.mxu1 %v1038_v61 }
  0x70   :  { %922 = vmatprep.subr.bf16.mxu0 %v1039_v62  ;;  %944 = vmatprep.subr.bf16.mxu1 %v1040_v63 }
  0x73   :  { %923 = vmatpush3.bf16.msra.mxu0 %v1041_v0  ;;  %945 = vmatpush3.bf16.msra.mxu1 %v1042_v1 }
 0x116   :  { %v331_v11 = vpop.f32.mrf.mxu0  ;;  %v374_v12 = vpop.f32.mrf.mxu1 }
 0x117   :  { %v1225_v15 = vadd.f32 %v331_v11, %v114_v9  ;;  %v1227_v16 = vadd.f32 %v374_v12, %v122_v10 }
 0x118   :  { %v333_v17 = vpop.f32.mrf.mxu0  ;;  %v376_v18 = vpop.f32.mrf.mxu1 }
 0x119   :  { %v391_v19 = vmul.f32 %v1225_v15, %v1225_v15  ;;  %v393_v20 = vmul.f32 %v1227_v16, %v1227_v16  ;;  %v1233_v21 = vadd.f32 %v333_v17, %v118_v13  ;;  %v1235_v22 = vadd.f32 %v376_v18, %v126_v14 }
 0x11a   :  { %v335_v23 = vpop.f32.mrf.mxu0  ;;  %v378_v24 = vpop.f32.mrf.mxu1 }
 0x11b   :  { %v399_v25 = vmul.f32 %v391_v19, %v1225_v15  ;;  %v401_v26 = vmul.f32 %v393_v20, %v1227_v16  ;;  %v336_v27 = vadd.f32 %v335_v23, %v114_v9  ;;  %v1239_v28 = vadd.f32 %v378_v24, %v122_v10 }
 0x11c   :  { %v392_v29 = vmul.f32 %v1233_v21, %v1233_v21  ;;  %v394_v30 = vmul.f32 %v1235_v22, %v1235_v22  ;;  %v337_v31 = vpop.f32.mrf.mxu0  ;;  %v380_v35 = vpop.f32.mrf.mxu1  ;;  %v384_v20 = vmul.f32 0.5, %v1233_v21 }
 0x11d   :  { %v407_v32 = vmul.f32 0.044715, %v399_v25  ;;  %v409_v33 = vmul.f32 0.044715, %v401_v26  ;;  %v395_v34 = vmul.f32 %v336_v27, %v336_v27  ;;  %v397_v38 = vmul.f32 %v1239_v28, %v1239_v28 }
 0x11e   :  { %v400_v36 = vmul.f32 %v392_v29, %v1233_v21  ;;  %v402_v37 = vmul.f32 %v394_v30, %v1235_v22  ;;  %v338_v41 = vadd.f32 %v337_v31, %v118_v13  ;;  %v381_v45 = vadd.f32 %v380_v35, %v126_v14 }
 0x11f   :  { %v415_v39 = vadd.f32 %v407_v32, %v1225_v15  ;;  %v403_v40 = vmul.f32 %v395_v34, %v336_v27  ;;  %v405_v44 = vmul.f32 %v397_v38, %v1239_v28  ;;  %v417_v47 = vadd.f32 %v409_v33, %v1227_v16 }
 0x120   :  { %v408_v42 = vmul.f32 0.044715, %v400_v36  ;;  %v410_v43 = vmul.f32 0.044715, %v402_v37  ;;  %v396_v49 = vmul.f32 %v338_v41, %v338_v41  ;;  %v398_v53 = vmul.f32 %v381_v45, %v381_v45 }
 0x121   :  { %v423_v46 = vmul.f32 0.7978846, %v415_v39  ;;  %v411_v48 = vmul.f32 0.044715, %v403_v40  ;;  %v413_v52 = vmul.f32 0.044715, %v405_v44 }
 0x122   :  { %v416_v50 = vadd.f32 %v408_v42, %v1233_v21  ;;  %v418_v51 = vadd.f32 %v410_v43, %v1235_v22  ;;  %v404_v55 = vmul.f32 %v396_v49, %v338_v41  ;;  %v406_v61 = vmul.f32 %v398_v53, %v381_v45 }
 0x123   :  { %v419_v54 = vadd.f32 %v411_v48, %v336_v27  ;;  %v421_v58 = vadd.f32 %v413_v52, %v1239_v28  ;;  %1043 = vtanh.f32 %v423_v46  ;;  %v425_v62 = vmul.f32 0.7978846, %v417_v47 }
 0x124   :  { %v424_v56 = vmul.f32 0.7978846, %v416_v50  ;;  %v426_v57 = vmul.f32 0.7978846, %v418_v51  ;;  %v412_v60 = vmul.f32 0.044715, %v404_v55 }
 0x125   :  { %v427_v59 = vmul.f32 0.7978846, %v419_v54  ;;  %v429_v63 = vmul.f32 0.7978846, %v421_v58  ;;  %v414_v1 = vmul.f32 0.044715, %v406_v61 }
 0x126   :  { %1045 = vtanh.f32 %v424_v56  ;;  %v420_v0 = vadd.f32 %v412_v60, %v338_v41  ;;  %v383_v14 = vmul.f32 0.5, %v1225_v15  ;;  %v387_v17 = vmul.f32 0.5, %v336_v27 }
 0x127   :  { %1047 = vtanh.f32 %v426_v57  ;;  %v422_v3 = vadd.f32 %v414_v1, %v381_v45  ;;  %v388_v23 = vmul.f32 0.5, %v338_v41  ;;  %v389_v29 = vmul.f32 0.5, %v1239_v28 }
 0x128   :  { %1049 = vtanh.f32 %v427_v59  ;;  %v428_v2 = vmul.f32 0.7978846, %v420_v0  ;;  %v386_v30 = vmul.f32 0.5, %v1235_v22  ;;  %v390_v35 = vmul.f32 0.5, %v381_v45 }
 0x129   :  { %1051 = vtanh.f32 %v429_v63  ;;  %v430_v4 = vmul.f32 0.7978846, %v422_v3  ;;  %v385_v15 = vmul.f32 0.5, %v1227_v16  ;;  %v866_v16 = vld [vmem:[%s1273_s4] ss:$0 sm:$0xff] }
 0x12a   :  { %1053 = vtanh.f32 %v425_v62 }
 0x12b   :  { %1055 = vtanh.f32 %v428_v2 }
 0x12c   :  { %1057 = vtanh.f32 %v430_v4 }
 0x130   :  { %v1044_v5 = vpop.eup %1043 }
 0x131   :  { %v439_v18 = vadd.f32 1.0, %v1044_v5 }
 0x133   :  { %v1046_v6 = vpop.eup %1045  ;;  %v447_v27 = vmul.f32 %v439_v18, %v383_v14 }
 0x134   :  { %v1048_v7 = vpop.eup %1047  ;;  %v440_v12 = vadd.f32 1.0, %v1046_v6 }
 0x135   :  { %v1050_v8 = vpop.eup %1049  ;;  %v442_v25 = vadd.f32 1.0, %v1048_v7 }
 0x136   :  { %v1052_v9 = vpop.eup %1051  ;;  %v443_v10 = vadd.f32 1.0, %v1050_v8  ;;  %v448_v33 = vmul.f32 %v440_v12, %v384_v20 }
 0x137   :  { %v1054_v11 = vpop.eup %1053  ;;  %v445_v19 = vadd.f32 1.0, %v1052_v9  ;;  %v450_v21 = vmul.f32 %v442_v25, %v386_v30 }
 0x138   :  { %v1056_v13 = vpop.eup %1055  ;;  %v451_v31 = vmul.f32 %v443_v10, %v387_v17  ;;  %v441_v32 = vadd.f32 1.0, %v1054_v11 }
 0x139   :  { %v444_v24 = vadd.f32 1.0, %v1056_v13  ;;  %v1058_v26 = vpop.eup %1057  ;;  %v453_v37 = vmul.f32 %v445_v19, %v389_v29 }
 0x13a   :  { %v446_v36 = vadd.f32 1.0, %v1058_v26  ;;  %v455_v40 = vpack.c.bf16 %v451_v31, %v447_v27  ;;  %v449_v41 = vmul.f32 %v441_v32, %v385_v15 }
 0x13b   :  { %v452_v34 = vmul.f32 %v444_v24, %v388_v23 }
 0x13c   :  { %v454_v39 = vmul.f32 %v446_v36, %v390_v35  ;;  %v457_v28 = vpack.c.bf16 %v453_v37, %v449_v41 }
 0x13d   :  { %v456_v38 = vpack.c.bf16 %v452_v34, %v448_v33 }
 0x13e   :  { %v458_v42 = vpack.c.bf16 %v454_v39, %v450_v21 }
 0x13f   :  { %754 = vmatprep.mubr.bf16.mxu0 %v456_v38 }
 0x140   :  { %755 = vmatmul.mubr.bf16.vlgmr.msra.gmra.mxu0 %v455_v40  ;;  %795 = vmatprep.mubr.bf16.mxu1 %v458_v42 }
 0x141   :  { %796 = vmatmul.mubr.bf16.vlgmr.msra.gmra.mxu1 %v457_v28 }
 0x200   :  { %v924_v22 = vpop.f32.mrf.mxu0 }
 0x201   :  { %v946_v43 = vpop.f32.mrf.mxu1 }
 0x202   :  { %v925_v44 = vpop.f32.mrf.mxu0 }
 0x203   :  { %v926_v45 = vadd.f32 %v925_v44, %v924_v22  ;;  %v947_v46 = vpop.f32.mrf.mxu1 }
 0x204   :  { %v927_v47 = vpop.f32.mrf.mxu0  ;;  %v948_v53 = vadd.f32 %v947_v46, %v946_v43 }
 0x205   :  { %v949_v48 = vpop.f32.mrf.mxu1  ;;  %v757_v50 = vadd.f32 %v926_v45, %v866_v16 }
 0x206   :  { %v928_v49 = vpop.f32.mrf.mxu0 }
 0x207   :  { %v929_v51 = vadd.f32 %v928_v49, %v927_v47  ;;  %v950_v52 = vpop.f32.mrf.mxu1  ;;  %v798_v56 = vadd.f32 %v948_v53, %v757_v50 }
 0x208   :  { %v951_v55 = vadd.f32 %v950_v52, %v949_v48 }
 0x209   :  { %v760_v54 = vadd.f32 %v929_v51, %v866_v16 }
 0x20b   :  { %v801_v57 = vadd.f32 %v951_v55, %v760_v54 }
 0x20d   :  { %v906_v58 = vpack.c.bf16 %v801_v57, %v798_v56 }
 0x20f   :  { %907 = vst [vmem:[#allocation10] sm:$0xff] %v906_v58  }
 0x210   :  { %1150 = shalt.err (!%p1147_p10)
}
 0x211   :  { %825 = dma.vmem_to_hbm [thread:$0]  %s820_s16, 128, %s1274_s5, [#allocation4], %s1171_s28, %s1171_s28, %s1172_s29  }
 0x212   :  { %1165 = dma.done.wait [#allocation4], 128  }
 0x213   :  { %1166 = vsyncadd [#allocation4], 4294967168 }
 0x214   :  { %829 = vsyncpa [#allocation3], 1 }
 0x215   :  { %830 = vsyncpa [#allocation6], 1 }
 0x216   :  { %831 = vsyncpa [#allocation9], 1 }
 0x217   :  { %832 = vsyncpa [#allocation4], 1 }

</bundles_post_ra>
